<compile_context>
chip_gen: v7x
topology: tpu7x:2x2x1
jax: 0.10.0
libtpu: 0.0.40
codegen_flags: <defaults>
</compile_context>

<pallas_src>
import jax
import jax.numpy as jnp
from jax.experimental import pallas as pl
from jax.experimental.pallas import tpu as pltpu

NEG_SLOPE = 0.01

F_IN = 57
H1 = 64
H2 = 32


def _leaky_relu(x):
    return jnp.where(x > 0, x, NEG_SLOPE * x)


def _round_up(n, m):
    return ((n + m - 1) // m) * m


def mymlp_kernel(x_ref, w1_ref, b1_ref, w2_ref, b2_ref, w3_ref, b3_ref, o_ref):
    # One batch tile per grid step; the whole 3-layer MLP runs on the tile.
    # NOTE: every output row depends only on its own input row, so the ragged
    # final tile (uninitialized VMEM rows) is safe — do not add cross-row
    # reductions here.
    x = x_ref[...]

    h1 = jnp.dot(x, w1_ref[...], preferred_element_type=jnp.float32) + b1_ref[...]
    h1 = _leaky_relu(h1)

    h2 = jnp.dot(h1, w2_ref[...], preferred_element_type=jnp.float32) + b2_ref[...]
    h2 = _leaky_relu(h2)

    h3 = jnp.dot(h2, w3_ref[...], preferred_element_type=jnp.float32) + b3_ref[...]

    o_ref[...] = h3.astype(o_ref.dtype)


def _pick_tile_and_vmem_limit(B):
    """Generation-aware batch-tile cap + scoped-VMEM limit.

    Per-row VMEM footprint (f32, 128-lane padding, double-buffered I/O):
      x   : 128 lanes * 4 B * 2 buffers = 1024 B
      out : 128 lanes * 4 B * 2 buffers = 1024 B   (C=2 pads to 128 lanes)
      h1/h2/h3 intermediates           ~= 1536 B
    => ~3.5 KiB/row  =>  tb=8192 ~ 28 MiB, tb=16384 ~ 56 MiB (+ <0.3 MiB weights).
    """
    vmem_cap = 64 * 1024 * 1024  # conservative fallback (v7x per-TC)
    try:
        info_fn = getattr(pltpu, "get_tpu_info", None)
        if info_fn is not None:
            vmem_cap = int(info_fn().vmem_capacity_bytes)
    except Exception:
        pass

    if vmem_cap <= 64 * 1024 * 1024:
        # v7x: 64 MiB per TC — stop at 8192 rows, leave headroom.
        tb_cap = 8192
        vmem_limit = 48 * 1024 * 1024
    else:
        # v5e / v6e: 128 MiB — push to 16384 rows (per-step overhead < ~10%).
        tb_cap = 16384
        vmem_limit = 96 * 1024 * 1024

    tb = min(tb_cap, _round_up(B, 8))
    if B > 8:
        # Megacore clamp: keep >=2 grid steps so the "parallel" batch axis can
        # shard across both v7x TensorCores.
        tb = min(tb, max(8, _round_up(pl.cdiv(B, 2), 8)))
    tb = max(8, _round_up(tb, 8))
    return tb, vmem_limit


def mymlp_forward(x, params, *, tb=None):
    """x: [B, 57] float32. params: (in,out) weights 'w1..3', (1,out) biases 'b1..3'."""
    w1, b1 = params["w1"], params["b1"]
    w2, b2 = params["w2"], params["b2"]
    w3, b3 = params["w3"], params["b3"]

    B, F = x.shape
    C = w3.shape[1]

    auto_tb, vmem_limit = _pick_tile_and_vmem_limit(B)
    if tb is None:
        tb = auto_tb
    tb = max(8, _round_up(tb, 8))

    grid = (pl.cdiv(B, tb),)

    flops = 2 * B * (F_IN * H1 + H1 * H2 + H2 * C)
    bytes_accessed = 4 * (
        B * (F + C)                                   # activation stream
        + F_IN * H1 + H1 + H1 * H2 + H2 + H2 * C + C  # weights + biases
    )

    return pl.pallas_call(
        mymlp_kernel,
        out_shape=jax.ShapeDtypeStruct((B, C), jnp.float32),
        grid=grid,
        in_specs=[
            pl.BlockSpec((tb, F), lambda i: (i, 0)),        # x: batch-tiled stream
            pl.BlockSpec((F_IN, H1), lambda i: (0, 0)),     # w1: VMEM-resident
            pl.BlockSpec((1, H1), lambda i: (0, 0)),        # b1: VMEM-resident
            pl.BlockSpec((H1, H2), lambda i: (0, 0)),       # w2: VMEM-resident
            pl.BlockSpec((1, H2), lambda i: (0, 0)),        # b2: VMEM-resident
            pl.BlockSpec((H2, C), lambda i: (0, 0)),        # w3: VMEM-resident
            pl.BlockSpec((1, C), lambda i: (0, 0)),         # b3: VMEM-resident
        ],
        out_specs=pl.BlockSpec((tb, C), lambda i: (i, 0)),
        compiler_params=pltpu.CompilerParams(
            dimension_semantics=("parallel",),              # megacore on v7x
            vmem_limit_bytes=vmem_limit,                    # generation-aware
        ),
        cost_estimate=pl.CostEstimate(
            flops=flops, transcendentals=0, bytes_accessed=bytes_accessed
        ),
    )(x, w1, b1, w2, b2, w3, b3)


def init_params(key, num_classes=2):
    """Deterministic parameter init (PyTorch-Linear-style uniform ranges)."""
    sizes = [(F_IN, H1), (H1, H2), (H2, num_classes)]
    params = {}
    for i, (fan_in, fan_out) in enumerate(sizes, start=1):
        key, kw, kb = jax.random.split(key, 3)
        bound = 1.0 / jnp.sqrt(jnp.float32(fan_in))
        params[f"w{i}"] = jax.random.uniform(
            kw, (fan_in, fan_out), jnp.float32, minval=-bound, maxval=bound
        )
        params[f"b{i}"] = jax.random.uniform(
            kb, (1, fan_out), jnp.float32, minval=-bound, maxval=bound
        )
    return params


def reference_forward(x, params):
    h1 = _leaky_relu(x @ params["w1"] + params["b1"])
    h2 = _leaky_relu(h1 @ params["w2"] + params["b2"])
    return h2 @ params["w3"] + params["b3"]


if __name__ == "__main__":
    key = jax.random.PRNGKey(0)
    key, kx1, kx2 = jax.random.split(key, 3)

    params = init_params(key, num_classes=2)

    # Case 1: small batch, single grid step.
    batch = 8
    x = jax.random.normal(kx1, (batch, F_IN), dtype=jnp.float32)
    out = jax.block_until_ready(mymlp_forward(x, params))
    ref = reference_forward(x, params)
    assert out.shape == (batch, 2)
    assert jnp.allclose(out, ref, atol=1e-5, rtol=1e-5), "mismatch vs JAX reference (B=8)"

    # Case 2: batch not divisible by the tile -> auto tile (megacore clamp gives
    # 2 grid steps) and exercises ragged-tail masking.
    batch2 = 300
    x2 = jax.random.normal(kx2, (batch2, F_IN), dtype=jnp.float32)
    out2 = jax.block_until_ready(mymlp_forward(x2, params))
    ref2 = reference_forward(x2, params)
    assert out2.shape == (batch2, 2)
    assert jnp.allclose(out2, ref2, atol=1e-5, rtol=1e-5), "mismatch vs JAX reference (ragged auto-tile)"

    # Case 3: explicit small tile -> 3 grid steps with a ragged final tile.
    out3 = jax.block_until_ready(mymlp_forward(x2, params, tb=128))
    assert jnp.allclose(out3, ref2, atol=1e-5, rtol=1e-5), "mismatch vs JAX reference (tb=128)"

    print("KERNEL_OK")
</pallas_src>

<mosaic_0001>
module attributes {stable_mosaic.version = 11 : i64} {
  func.func @mymlp_kernel(%arg0: i32, %arg1: memref<8x57xf32, #tpu.memory_space<vmem>>, %arg2: memref<57x64xf32, #tpu.memory_space<vmem>>, %arg3: memref<1x64xf32, #tpu.memory_space<vmem>>, %arg4: memref<64x32xf32, #tpu.memory_space<vmem>>, %arg5: memref<1x32xf32, #tpu.memory_space<vmem>>, %arg6: memref<32x2xf32, #tpu.memory_space<vmem>>, %arg7: memref<1x2xf32, #tpu.memory_space<vmem>>, %arg8: memref<8x2xf32, #tpu.memory_space<vmem>>) attributes {dimension_semantics = [#tpu.dimension_semantics<parallel>], iteration_bounds = array<i64: 1>, scalar_prefetch = 0 : i64, scratch_operands = 0 : i64, tpu.core_type = #tpu.core_type<tc>, window_params = [{transform_indices = @transform_0, window_bounds = array<i64: 8, 57>}, {pipeline_mode = #tpu.pipeline_mode<synchronous>, transform_indices = @transform_1, window_bounds = array<i64: 57, 64>}, {pipeline_mode = #tpu.pipeline_mode<synchronous>, transform_indices = @transform_2, window_bounds = array<i64: 1, 64>}, {pipeline_mode = #tpu.pipeline_mode<synchronous>, transform_indices = @transform_3, window_bounds = array<i64: 64, 32>}, {pipeline_mode = #tpu.pipeline_mode<synchronous>, transform_indices = @transform_4, window_bounds = array<i64: 1, 32>}, {pipeline_mode = #tpu.pipeline_mode<synchronous>, transform_indices = @transform_5, window_bounds = array<i64: 32, 2>}, {pipeline_mode = #tpu.pipeline_mode<synchronous>, transform_indices = @transform_6, window_bounds = array<i64: 1, 2>}, {transform_indices = @transform_7, window_bounds = array<i64: 8, 2>}]} {
    %c0 = arith.constant 0 : index
    %c0_0 = arith.constant 0 : index
    %0 = vector.load %arg1[%c0, %c0_0] : memref<8x57xf32, #tpu.memory_space<vmem>>, vector<8x57xf32>
    %c0_1 = arith.constant 0 : index
    %c0_2 = arith.constant 0 : index
    %1 = vector.load %arg2[%c0_1, %c0_2] : memref<57x64xf32, #tpu.memory_space<vmem>>, vector<57x64xf32>
    %cst = arith.constant dense<0.000000e+00> : vector<8x64xf32>
    %2 = tpu.matmul %0, %1, %cst {dimension_numbers = #tpu.dot_dimension_numbers<[1], [0], [0], [1], [0, 0, 1, 1], [], []>} : vector<8x57xf32>, vector<57x64xf32>, vector<8x64xf32> -> vector<8x64xf32>
    %c0_3 = arith.constant 0 : index
    %c0_4 = arith.constant 0 : index
    %3 = vector.load %arg3[%c0_3, %c0_4] : memref<1x64xf32, #tpu.memory_space<vmem>>, vector<1x64xf32>
    %4 = vector.broadcast %3 : vector<1x64xf32> to vector<8x64xf32>
    %5 = arith.addf %2, %4 : vector<8x64xf32>
    %cst_5 = arith.constant 0.000000e+00 : f32
    %6 = vector.broadcast %cst_5 : f32 to vector<8x64xf32>
    %7 = arith.cmpf ogt, %5, %6 : vector<8x64xf32>
    %cst_6 = arith.constant 0.00999999977 : f32
    %8 = vector.broadcast %cst_6 : f32 to vector<8x64xf32>
    %9 = arith.mulf %8, %5 : vector<8x64xf32>
    %10 = arith.select %7, %5, %9 : vector<8x64xi1>, vector<8x64xf32>
    %c0_7 = arith.constant 0 : index
    %c0_8 = arith.constant 0 : index
    %11 = vector.load %arg4[%c0_7, %c0_8] : memref<64x32xf32, #tpu.memory_space<vmem>>, vector<64x32xf32>
    %cst_9 = arith.constant dense<0.000000e+00> : vector<8x32xf32>
    %12 = tpu.matmul %10, %11, %cst_9 {dimension_numbers = #tpu.dot_dimension_numbers<[1], [0], [0], [1], [0, 0, 1, 1], [], []>} : vector<8x64xf32>, vector<64x32xf32>, vector<8x32xf32> -> vector<8x32xf32>
    %c0_10 = arith.constant 0 : index
    %c0_11 = arith.constant 0 : index
    %13 = vector.load %arg5[%c0_10, %c0_11] : memref<1x32xf32, #tpu.memory_space<vmem>>, vector<1x32xf32>
    %14 = vector.broadcast %13 : vector<1x32xf32> to vector<8x32xf32>
    %15 = arith.addf %12, %14 : vector<8x32xf32>
    %cst_12 = arith.constant 0.000000e+00 : f32
    %16 = vector.broadcast %cst_12 : f32 to vector<8x32xf32>
    %17 = arith.cmpf ogt, %15, %16 : vector<8x32xf32>
    %cst_13 = arith.constant 0.00999999977 : f32
    %18 = vector.broadcast %cst_13 : f32 to vector<8x32xf32>
    %19 = arith.mulf %18, %15 : vector<8x32xf32>
    %20 = arith.select %17, %15, %19 : vector<8x32xi1>, vector<8x32xf32>
    %c0_14 = arith.constant 0 : index
    %c0_15 = arith.constant 0 : index
    %21 = vector.load %arg6[%c0_14, %c0_15] : memref<32x2xf32, #tpu.memory_space<vmem>>, vector<32x2xf32>
    %cst_16 = arith.constant dense<0.000000e+00> : vector<8x2xf32>
    %22 = tpu.matmul %20, %21, %cst_16 {dimension_numbers = #tpu.dot_dimension_numbers<[1], [0], [0], [1], [0, 0, 1, 1], [], []>} : vector<8x32xf32>, vector<32x2xf32>, vector<8x2xf32> -> vector<8x2xf32>
    %c0_17 = arith.constant 0 : index
    %c0_18 = arith.constant 0 : index
    %23 = vector.load %arg7[%c0_17, %c0_18] : memref<1x2xf32, #tpu.memory_space<vmem>>, vector<1x2xf32>
    %24 = vector.broadcast %23 : vector<1x2xf32> to vector<8x2xf32>
    %25 = arith.addf %22, %24 : vector<8x2xf32>
    %c0_19 = arith.constant 0 : index
    %c0_20 = arith.constant 0 : index
    %26 = vector.load %arg8[%c0_19, %c0_20] : memref<8x2xf32, #tpu.memory_space<vmem>>, vector<8x2xf32>
    tpu.vector_store %arg8[%c0_19, %c0_20], %25 {strides = array<i32>} : memref<8x2xf32, #tpu.memory_space<vmem>>, vector<8x2xf32>,
    return
  }
  func.func @transform_0(%arg0: i32) -> (i32, i32) {
    %c0_i32 = arith.constant 0 : i32
    %c0_i32_0 = arith.constant 0 : i32
    return %arg0, %c0_i32 : i32, i32
  }
  func.func @transform_1(%arg0: i32) -> (i32, i32) {
    %c0_i32 = arith.constant 0 : i32
    %c0_i32_0 = arith.constant 0 : i32
    %c0_i32_1 = arith.constant 0 : i32
    return %c0_i32, %c0_i32_0 : i32, i32
  }
  func.func @transform_2(%arg0: i32) -> (i32, i32) {
    %c0_i32 = arith.constant 0 : i32
    %c0_i32_0 = arith.constant 0 : i32
    %c0_i32_1 = arith.constant 0 : i32
    return %c0_i32, %c0_i32_0 : i32, i32
  }
  func.func @transform_3(%arg0: i32) -> (i32, i32) {
    %c0_i32 = arith.constant 0 : i32
    %c0_i32_0 = arith.constant 0 : i32
    %c0_i32_1 = arith.constant 0 : i32
    return %c0_i32, %c0_i32_0 : i32, i32
  }
  func.func @transform_4(%arg0: i32) -> (i32, i32) {
    %c0_i32 = arith.constant 0 : i32
    %c0_i32_0 = arith.constant 0 : i32
    %c0_i32_1 = arith.constant 0 : i32
    return %c0_i32, %c0_i32_0 : i32, i32
  }
  func.func @transform_5(%arg0: i32) -> (i32, i32) {
    %c0_i32 = arith.constant 0 : i32
    %c0_i32_0 = arith.constant 0 : i32
    %c0_i32_1 = arith.constant 0 : i32
    return %c0_i32, %c0_i32_0 : i32, i32
  }
  func.func @transform_6(%arg0: i32) -> (i32, i32) {
    %c0_i32 = arith.constant 0 : i32
    %c0_i32_0 = arith.constant 0 : i32
    %c0_i32_1 = arith.constant 0 : i32
    return %c0_i32, %c0_i32_0 : i32, i32
  }
  func.func @transform_7(%arg0: i32) -> (i32, i32) {
    %c0_i32 = arith.constant 0 : i32
    %c0_i32_0 = arith.constant 0 : i32
    return %arg0, %c0_i32 : i32, i32
  }
}

</mosaic_0001>

<bundles_post_ra>
// kernel: tpu_custom_call.1
= control target key start
LH: loop header
LB: loop body
LE: loop exit
PB: predicated region body
PF: predicated region fallthrough
CT: control target
= control target key end

     0   :  { %v420_v0 = vmov 0.0|0.0   ;;  %vm421_vm0 = vmmov 0   ;;  %v422_v6 = vmov 0.0   ;;  %vm46_vm1 = vcmask 1040384   ;;  %s542_s1 = inlined_call_operand.vmem [shape: f32[57,64], index: 1, kind: input, shape index: {}]   ;;  %s543_s3 = inlined_call_operand.vmem [shape: f32[64,32], index: 3, kind: input, shape index: {}]   ;;  %s544_s0 = inlined_call_operand.vmem [shape: f32[8,57], index: 0, kind: input, shape index: {}]   ;;  %s545_s5 = inlined_call_operand.vmem [shape: f32[32,2], index: 5, kind: input, shape index: {}]   ;;  %s546_s2 = inlined_call_operand.vmem [shape: f32[1,64], index: 2, kind: input, shape index: {}]   ;;  %s547_s4 = inlined_call_operand.vmem [shape: f32[1,32], index: 4, kind: input, shape index: {}]   ;;  %s548_s6 = inlined_call_operand.vmem [shape: f32[1,2], index: 6, kind: input, shape index: {}]   ;;  %s549_s7 = inlined_call_operand.vmem [shape: f32[8,2], index: 7, kind: output, shape index: {}]  }
   0x1   :  { %385 = vmatprep.subr.bf16.mxu0 %v420_v0  ;;  %v27_v1 = vld [vmem:[%s542_s1] sm:$0xff]  ;;  %v28_v2 = vld [vmem:[%s542_s1 + $0x8] sm:$0xff]  ;;  %v29_v3 = vld [vmem:[%s542_s1 + $0x10] sm:$0xff]  ;;  %398 = vmatprep.subr.bf16.mxu1 %v420_v0  ;;  %vm423_vm2 = vmmov 1   ;;  %vm42_vm4 = vcmask 465920   ;;  %vm138_vm6 = vcmask 523264  }
   0x2   :  { %v386_v4 = vpack.c.bf16 %v28_v2, %v27_v1  ;;  %v30_v5 = vld [vmem:[%s542_s1 + $0x18] sm:$0xff]  ;;  %352 = vmatprep.mubr.msk.f32.mxu0 %vm421_vm0, %v422_v6  ;;  %371 = vmatprep.mubr.msk.f32.mxu1 %vm421_vm0, %v422_v6  ;;  %v31_v8 = vld [vmem:[%s542_s1 + $0x20] sm:$0xff]  ;;  %v124_v10 = vld [vmem:[%s543_s3 + $0x8] sm:$0xff]  ;;  %vm226_vm8 = vcmask 261120   ;;  %vm300_vm9 = vcmask 15360  }
   0x3   :  { %v389_v7 = vpack.c.bf16 %v30_v5, %v29_v3  ;;  %v123_v9 = vld [vmem:[%s543_s3] sm:$0xff]  ;;  %v32_v11 = vld [vmem:[%s542_s1 + $0x28] sm:$0xff]  ;;  %v125_v13 = vld [vmem:[%s543_s3 + $0x10] sm:$0xff] }
   0x4   :  { %387 = vmatpush3.bf16.msra.mxu0 %v386_v4  ;;  %v399_v12 = vpack.c.bf16 %v124_v10, %v123_v9  ;;  %v126_v14 = vld [vmem:[%s543_s3 + $0x18] sm:$0xff]  ;;  %v392_v16 = vpack.c.bf16 %v32_v11, %v31_v8  ;;  %v127_v17 = vld [vmem:[%s543_s3 + $0x20] sm:$0xff]  ;;  %v128_v18 = vld [vmem:[%s543_s3 + $0x28] sm:$0xff] }
   0x5   :  { %388 = vmatprep.subr.bf16.mxu0 %v420_v0  ;;  %v402_v15 = vpack.c.bf16 %v126_v14, %v125_v13  ;;  %v33_v19 = vld [vmem:[%s542_s1 + $0x30] sm:$0xff]  ;;  %v34_v20 = vld [vmem:[%s542_s1 + $0x38] sm:$0x1]  ;;  %v405_v21 = vpack.c.bf16 %v128_v18, %v127_v17  ;;  %vm396_vm3 = vmpackc.low %vm46_vm1, %vm423_vm2 }
   0x6   :  { %400 = vmatpush3.bf16.msra.mxu1 %v399_v12  ;;  %v395_v22 = vpack.c.bf16 %v34_v20, %v33_v19  ;;  %v26_v23 = vld [vmem:[%s544_s0] sm:$0xff]  ;;  %v129_v24 = vld [vmem:[%s543_s3 + $0x30] sm:$0xff]  ;;  %v130_v25 = vld [vmem:[%s543_s3 + $0x38] sm:$0xff] }
   0x7   :  { %401 = vmatprep.subr.bf16.mxu1 %v420_v0  ;;  %v408_v26 = vpack.c.bf16 %v130_v25, %v129_v24  ;;  %v215_v27 = vld [vmem:[%s545_s5] sm:$0xff]  ;;  %v216_v28 = vld [vmem:[%s545_s5 + $0x8] sm:$0xff]  ;;  %v217_v36 = vld [vmem:[%s545_s5 + $0x10] sm:$0xff] }
   0x8   :  { %390 = vmatpush3.bf16.msra.mxu0 %v389_v7  ;;  %v411_v29 = vpack.c.bf16 %v216_v28, %v215_v27  ;;  %v306_v30 = vld [vmem:[%s546_s2] ss:$0 sm:$0xff]  ;;  %v218_v37 = vld [vmem:[%s545_s5 + $0x18] sm:$0xff] }
   0x9   :  { %391 = vmatprep.subr.bf16.mxu0 %v420_v0  ;;  %v414_v38 = vpack.c.bf16 %v218_v37, %v217_v36  ;;  %v309_v39 = vld [vmem:[%s547_s4] ss:$0 sm:$0xff] }
   0xa   :  { %403 = vmatpush3.bf16.msra.mxu1 %v402_v15  ;;  %v311_v45 = vld [vmem:[%s548_s6] ss:$0 sm:$0xff] }
   0xb   :  { %404 = vmatprep.subr.bf16.mxu1 %v420_v0 }
   0xc   :  { %393 = vmatpush3.bf16.msra.mxu0 %v392_v16 }
   0xd   :  { %394 = vmatprep.subr.bf16.mxu0 %v420_v0 }
   0xe   :  { %406 = vmatpush3.bf16.msra.mxu1 %v405_v21 }
   0xf   :  { %407 = vmatprep.subr.bf16.mxu1 %v420_v0 }
  0x10   :  { %397 = vmatpush3.bf16.msk.msra.mxu0 %vm396_vm3, %v395_v22 }
  0x11   :  { %410 = vmatprep.subr.bf16.mxu0 %v420_v0 }
  0x12   :  { %409 = vmatpush3.bf16.msra.mxu1 %v408_v26 }
  0x13   :  { %353 = vmatmul.mubr.msk.f32.vlgmr.msra.gmra.mrb[0].mxu0 %vm42_vm4, %v26_v23 }
  0x14   :  { %382 = vmatprep.mubr.msk.f32.mxu0 %vm421_vm0, %v422_v6  ;;  %412 = vmatpush3.bf16.msra.mxu0 %v411_v29 }
  0x15   :  { %413 = vmatprep.subr.bf16.mxu0 %v420_v0 }
  0x18   :  { %415 = vmatpush3.bf16.msra.mxu0 %v414_v38 }
  0xe6   :  { %v116_v31 = vpop.f32.mrb[0].mxu0 }
  0xe7   :  { %v117_v32 = vadd.f32 %v306_v30, %v116_v31  ;;  %v354_v33 = vpop.f32.mrb[1].mxu0 }
  0xe9   :  { %vm120_vm5 = vcmp.gt.f32.partialorder %v117_v32, 0.0  ;;  %v121_v34 = vmul.f32 0.01, %v117_v32 }
  0xeb   :  { %v122_v35 = vsel %vm120_vm5, %v117_v32, %v121_v34 }
  0xec   :  { %372 = vmatmul.mubr.msk.f32.vlgmr.msra.gmra.mrb[0].mxu1 %vm138_vm6, %v122_v35 }
 0x1bf   :  { %v208_v40 = vpop.f32.mrb[0].mxu1 }
 0x1c0   :  { %v209_v41 = vadd.f32 %v309_v39, %v208_v40  ;;  %v373_v42 = vpop.f32.mrb[1].mxu1 }
 0x1c2   :  { %vm212_vm7 = vcmp.gt.f32.partialorder %v209_v41, 0.0  ;;  %v213_v43 = vmul.f32 0.01, %v209_v41 }
 0x1c4   :  { %v214_v44 = vsel %vm212_vm7, %v209_v41, %v213_v43 }
 0x1c5   :  { %383 = vmatmul.mubr.msk.f32.vlgmr.msra.gmra.mrb[2].mxu0 %vm226_vm8, %v214_v44 }
 0x298   :  { %v296_v46 = vpop.f32.mrb[2].mxu0 }
 0x299   :  { %v297_v47 = vadd.f32 %v311_v45, %v296_v46  ;;  %v384_v48 = vpop.f32.mrb[3].mxu0 }
 0x29b   :  { %301 = vst.msk [vmem:[%s549_s7] sm:$0xff] %vm300_vm9, %v297_v47 }

</bundles_post_ra>
